<compile_context>
chip_gen: v7x
topology: tpu7x:2x2x1
jax: 0.10.0
libtpu: 0.0.40
codegen_flags: <defaults>
</compile_context>

<pallas_src>
import numpy as np
import jax
import jax.numpy as jnp
from jax.experimental import pallas as pl
from jax.experimental.pallas import tpu as pltpu


_LANE = 128
_MAX_TILE_LANES = 8192   # big enough to amortize per-step overhead, small
                         # enough for v7x's 64 MiB VMEM with double-buffering.


def _round_up(v, m):
    return -(-v // m) * m


# ----------------------------------------------------------------------------
# Kernels (pure VPU: broadcast-multiply by per-sample scale)
# ----------------------------------------------------------------------------
def _drop_path_kernel(scale_ref, x_ref, o_ref):
    # scale_ref: (B, 1) in {0, 1/keep_prob};  x_ref/o_ref: (B, TILE)
    o_ref[...] = (x_ref[...].astype(jnp.float32) * scale_ref[...]).astype(o_ref.dtype)


def _drop_path_add_kernel(scale_ref, r_ref, b_ref, o_ref):
    # fused residual:  out = residual + drop_path(branch)
    o_ref[...] = (r_ref[...].astype(jnp.float32)
                  + b_ref[...].astype(jnp.float32) * scale_ref[...]).astype(o_ref.dtype)


# ----------------------------------------------------------------------------
# Wrappers
# ----------------------------------------------------------------------------
def _lane_tiling(n_rows, n_cols, itemsize):
    """Pick a lane tile (multiple of 128) and the padded column count."""
    vmem_budget = 8 << 20   # conservative: double-buffered in+out on all gens
    cap = vmem_budget // (8 * max(n_rows, 1) * max(itemsize, 1))
    cap = max(_LANE, (cap // _LANE) * _LANE)
    tile = min(_MAX_TILE_LANES, cap, _round_up(max(n_cols, 1), _LANE))
    padded = _round_up(max(n_cols, 1), tile)
    return tile, padded


def _per_sample_scale(batch, drop_prob, key):
    """Per-sample scale in {0, 1/keep_prob}, shape (batch, 1), float32.

    Matches torch's  floor(rand + keep_prob) / keep_prob  semantics:
    keep with probability keep_prob, then scale kept samples by 1/keep_prob.
    """
    # TODO(synk): exact reproduction of torch.rand's bit-stream is not possible;
    # this draws Bernoulli(keep_prob) per sample from jax.random instead.
    keep_prob = 1.0 - float(drop_prob)
    keep = jax.random.bernoulli(key, keep_prob, (batch, 1))
    return keep.astype(jnp.float32) * jnp.float32(1.0 / keep_prob)


def _run(kernel, arrays, scale):
    """Shared driver: flatten to (B, L), lane-dense tiles, parallel grid."""
    x = arrays[0]
    B = int(x.shape[0])
    L = 1
    for d in x.shape[1:]:
        L *= int(d)
    flats = [a.reshape(B, L) for a in arrays]
    tile, padded = _lane_tiling(B, L, x.dtype.itemsize)
    if padded != L:
        flats = [jnp.pad(a, ((0, 0), (0, padded - L))) for a in flats]

    x_spec = pl.BlockSpec((B, tile), lambda j: (0, j))
    scale_spec = pl.BlockSpec((B, 1), lambda j: (0, 0))   # full array, resident

    out = pl.pallas_call(
        kernel,
        grid=(padded // tile,),
        in_specs=[scale_spec] + [x_spec] * len(flats),
        out_specs=x_spec,
        out_shape=jax.ShapeDtypeStruct((B, padded), x.dtype),
        compiler_params=pltpu.CompilerParams(
            dimension_semantics=("parallel",)),
    )(scale, *flats)
    return out[:, :L].reshape(x.shape)


def drop_path(x, drop_prob, training=False, key=None):
    """Pallas TPU equivalent of torch drop_path(x, drop_prob, training)."""
    if (drop_prob is None) or (float(drop_prob) == 0.0) or (not training):
        return x                               # exact eval-mode semantics
    if key is None:
        key = jax.random.PRNGKey(0)
    scale = _per_sample_scale(int(x.shape[0]), drop_prob, key)
    return _run(_drop_path_kernel, (x,), scale)


def drop_path_add(residual, branch, drop_prob, training=False, key=None):
    """Fused `residual + drop_path(branch)` — single HBM pass over activations."""
    assert residual.shape == branch.shape
    if (drop_prob is None) or (float(drop_prob) == 0.0) or (not training):
        return residual + branch
    if key is None:
        key = jax.random.PRNGKey(0)
    scale = _per_sample_scale(int(residual.shape[0]), drop_prob, key)
    return _run(_drop_path_add_kernel, (residual, branch), scale)


class DropPath:
    """Mirrors the nn.Module interface of the reference."""

    def __init__(self, drop_prob=None):
        self.drop_prob = drop_prob
        self.training = True

    def __call__(self, x, key=None):
        return drop_path(x, self.drop_prob, self.training, key)

    def extra_repr(self):
        return 'p={}'.format(self.drop_prob)


# ----------------------------------------------------------------------------
if __name__ == "__main__":
    key = jax.random.PRNGKey(0)
    kx, kbig, kres, kbr, kd1, kd2, kd3 = jax.random.split(key, 7)

    B, N, C = 2, 64, 32                 # token tensor shape as used in ViT blocks
    drop_prob = 0.25
    keep_prob = 1.0 - drop_prob

    x = jax.random.normal(kx, (B, N, C), jnp.float32)

    # --- training mode: per-sample scale is 0 or 1/keep_prob -----------------
    y = jax.block_until_ready(drop_path(x, drop_prob, training=True, key=kd1))
    assert y.shape == x.shape and y.dtype == x.dtype
    xn, yn = np.asarray(x), np.asarray(y)
    for b in range(B):
        kept = np.allclose(yn[b], xn[b] / keep_prob, rtol=1e-5, atol=1e-5)
        dropped = np.allclose(yn[b], 0.0, atol=1e-6)
        assert kept or dropped, f"sample {b}: invalid drop_path output"

    # --- eval mode: identity --------------------------------------------------
    y_eval = drop_path(x, drop_prob, training=False, key=kd1)
    assert y_eval is x
    y_none = DropPath(None)(x)          # drop_prob=None -> identity
    assert y_none is x

    # --- multi-tile grid: per-sample mask must be consistent across lane tiles
    x_big = jax.random.normal(kbig, (2, 24, 1024), jnp.float32)   # L=24576
    yb = jax.block_until_ready(drop_path(x_big, drop_prob, training=True, key=kd2))
    xbn, ybn = np.asarray(x_big), np.asarray(yb)
    for b in range(2):
        kept = np.allclose(ybn[b], xbn[b] / keep_prob, rtol=1e-5, atol=1e-5)
        dropped = np.allclose(ybn[b], 0.0, atol=1e-6)
        assert kept or dropped, f"big sample {b}: mask inconsistent across tiles"

    # --- fused residual: x + drop_path(branch) --------------------------------
    res = jax.random.normal(kres, (B, N, C), jnp.float32)
    branch = jax.random.normal(kbr, (B, N, C), jnp.float32)
    z = jax.block_until_ready(
        drop_path_add(res, branch, drop_prob, training=True, key=kd3))
    rn, bn, zn = np.asarray(res), np.asarray(branch), np.asarray(z)
    for b in range(B):
        kept = np.allclose(zn[b], rn[b] + bn[b] / keep_prob, rtol=1e-5, atol=1e-5)
        dropped = np.allclose(zn[b], rn[b], rtol=1e-5, atol=1e-5)
        assert kept or dropped, f"fused sample {b}: invalid output"

    print("KERNEL_OK")
</pallas_src>

<mosaic_0001>
module attributes {stable_mosaic.version = 11 : i64} {
  func.func @_drop_path_kernel(%arg0: i32, %arg1: memref<2x1xf32, #tpu.memory_space<vmem>>, %arg2: memref<2x2048xf32, #tpu.memory_space<vmem>>, %arg3: memref<2x2048xf32, #tpu.memory_space<vmem>>) attributes {dimension_semantics = [#tpu.dimension_semantics<parallel>], iteration_bounds = array<i64: 1>, scalar_prefetch = 0 : i64, scratch_operands = 0 : i64, tpu.core_type = #tpu.core_type<tc>, window_params = [{pipeline_mode = #tpu.pipeline_mode<synchronous>, transform_indices = @transform_0, window_bounds = array<i64: 2, 1>}, {transform_indices = @transform_1, window_bounds = array<i64: 2, 2048>}, {transform_indices = @transform_2, window_bounds = array<i64: 2, 2048>}]} {
    %c0 = arith.constant 0 : index
    %c0_0 = arith.constant 0 : index
    %0 = vector.load %arg2[%c0, %c0_0] : memref<2x2048xf32, #tpu.memory_space<vmem>>, vector<2x2048xf32>
    %c0_1 = arith.constant 0 : index
    %c0_2 = arith.constant 0 : index
    %1 = vector.load %arg1[%c0_1, %c0_2] : memref<2x1xf32, #tpu.memory_space<vmem>>, vector<2x1xf32>
    %2 = vector.broadcast %1 : vector<2x1xf32> to vector<2x2048xf32>
    %3 = arith.mulf %0, %2 : vector<2x2048xf32>
    %c0_3 = arith.constant 0 : index
    %c0_4 = arith.constant 0 : index
    %4 = vector.load %arg3[%c0_3, %c0_4] : memref<2x2048xf32, #tpu.memory_space<vmem>>, vector<2x2048xf32>
    tpu.vector_store %arg3[%c0_3, %c0_4], %3 {strides = array<i32>} : memref<2x2048xf32, #tpu.memory_space<vmem>>, vector<2x2048xf32>,
    return
  }
  func.func @transform_0(%arg0: i32) -> (i32, i32) {
    %c0_i32 = arith.constant 0 : i32
    %c0_i32_0 = arith.constant 0 : i32
    %c0_i32_1 = arith.constant 0 : i32
    return %c0_i32, %c0_i32_0 : i32, i32
  }
  func.func @transform_1(%arg0: i32) -> (i32, i32) {
    %c0_i32 = arith.constant 0 : i32
    %c0_i32_0 = arith.constant 0 : i32
    return %c0_i32, %arg0 : i32, i32
  }
  func.func @transform_2(%arg0: i32) -> (i32, i32) {
    %c0_i32 = arith.constant 0 : i32
    %c0_i32_0 = arith.constant 0 : i32
    return %c0_i32, %arg0 : i32, i32
  }
}

</mosaic_0001>

<bundles_post_ra>
// kernel: tpu_custom_call.1
= control target key start
LH: loop header
LB: loop body
LE: loop exit
PB: predicated region body
PF: predicated region fallthrough
CT: control target
= control target key end

     0   :  { %7 = vsyncpa [#allocation3], 0  ;;  %s163_s0 = inlined_call_operand.vmem [shape: f32[2,1], index: 0, kind: input, shape index: {}]   ;;  %s164_s1 = inlined_call_operand.hbm [shape: f32[2,2048], index: 1, kind: input, shape index: {}]   ;;  %s165_s2 = inlined_call_operand.hbm [shape: f32[2,2048], index: 2, kind: output, shape index: {}]  }
   0x1   :  { %8 = vsyncpa [#allocation4], 0  ;;  %s117_s9 = smov [#allocation2]   ;;  %s69_s13 = scalar_lea.hbm %s164_s1, 512 }
   0x2   :  { %s17_s10 = sshll.u32 %s117_s9, 4  ;;  %p70_p0 = scmp.ne.s32.totalorder %s164_s1, %s69_s13  ;;  %s18_s10 = int_to_ptr.vmem [resolvable:$true] %s17_s10 }
   0x3   :  { %p73_p1 = scmp.lt.u32.totalorder %s69_s13, %s164_s1 }
   0x5   :  { %p75_p2 = pnand %p73_p1, %p70_p0 }
   0x7   :  { %78 = shalt.err (!%p75_p2)
}
   0x8   :  { %s79_s18 = scalar_lea.vmem %s18_s10, 512  ;;  %p84_p4 = scmp.lt.s32.totalorder %s18_s10, %s18_s10 }
   0x9   :  { %p80_p3 = scmp.ne.s32.totalorder %s18_s10, %s79_s18  ;;  %p85_p5 = scmp.lt.s32.totalorder %s79_s18, %s79_s18 }
   0xb   :  { %p86_p6 = por %p85_p5, %p84_p4 }
   0xd   :  { %p87_p7 = pnand %p86_p6, %p80_p3 }
   0xf   :  { %90 = shalt.err (!%p87_p7)
}
  0x10   :  { %20 = dma.hbm_to_vmem [thread:$0]  %s164_s1, 512, %s18_s10, [#allocation3]  }
  0x11   :  { %113 = dma.done.wait [#allocation3], 512  }
  0x12   :  { %114 = vsyncadd [#allocation3], 4294966784  ;;  %v118_v0 = vmov 0   ;;  %v28_v1 = vld [vmem:[%s163_s0] sm:$0x3]  ;;  %v36_v4 = vlaneseq  ;;  %v25_v10 = vld [vmem:[#allocation2 + $0x8] sm:$0xff] }
  0x13   :  { %68 = vset.pattern.permute.xlu0 %v118_v0  ;;  %v119_v2 = vmov 269488144   ;;  %v24_v8 = vld [vmem:[#allocation2] sm:$0xff]  ;;  %v26_v11 = vld [vmem:[#allocation2 + $0x10] sm:$0xff]  ;;  %v27_v12 = vld [vmem:[#allocation2 + $0x18] sm:$0xff]  ;;  %s120_s1 = smov [#allocation5]  }
  0x14   :  { %31 = vperm.xlu0 %68, %v28_v1   ;;  %v34_v3 = vunpack.c.l.s4 %v119_v2  ;;  %v37_v6 = vshrl.u32 %v36_v4, 7  ;;  %s55_s23 = sshll.u32 %s120_s1, 4  ;;  %s56_s23 = int_to_ptr.vmem [resolvable:$true] %s55_s23 }
  0x15   :  { %s91_s0 = scalar_lea.vmem %s56_s23, 512  ;;  %p96_p9 = scmp.lt.s32.totalorder %s56_s23, %s56_s23 }
  0x16   :  { %v35_v5 = vunpack.c.0.s8 %v34_v3  ;;  %p92_p8 = scmp.ne.s32.totalorder %s56_s23, %s91_s0  ;;  %p97_p10 = scmp.lt.s32.totalorder %s91_s0, %s91_s0 }
  0x18   :  { %v38_v7 = vsub.s32 %v35_v5, %v37_v6  ;;  %p98_p11 = por %p97_p10, %p96_p9 }
  0x1a   :  { %p99_p12 = pnand %p98_p11, %p92_p8 }
  0x93   :  { %v32_v9 = vpop.permute.xlu0 %31 }
  0x94   :  { %v39_v13 = vrot.slane %v32_v9, %v38_v7 }
  0x96   :  { %v41_v14 = vmul.f32 %v39_v13, %v24_v8  ;;  %v42_v15 = vmul.f32 %v39_v13, %v25_v10  ;;  %v43_v16 = vmul.f32 %v39_v13, %v26_v11  ;;  %v44_v17 = vmul.f32 %v39_v13, %v27_v12 }
  0x98   :  { %45 = vst [vmem:[#allocation5] sm:$0xff] %v41_v14  ;;  %46 = vst [vmem:[#allocation5 + $0x8] sm:$0xff] %v42_v15 }
  0x99   :  { %47 = vst [vmem:[#allocation5 + $0x10] sm:$0xff] %v43_v16  ;;  %48 = vst [vmem:[#allocation5 + $0x18] sm:$0xff] %v44_v17 }
  0x9a   :  { %102 = shalt.err (!%p99_p12)
}
  0x9b   :  { %s103_s26 = scalar_lea.hbm %s165_s2, 512 }
  0x9c   :  { %p104_p13 = scmp.ne.s32.totalorder %s165_s2, %s103_s26  ;;  %p107_p0 = scmp.lt.u32.totalorder %s103_s26, %s165_s2 }
  0x9e   :  { %p109_p1 = pnand %p107_p0, %p104_p13 }
  0xa0   :  { %112 = shalt.err (!%p109_p1)
}
  0xa1   :  { %58 = dma.vmem_to_hbm [thread:$0]  %s56_s23, 512, %s165_s2, [#allocation4]  }
  0xa2   :  { %115 = dma.done.wait [#allocation4], 512  }
  0xa3   :  { %116 = vsyncadd [#allocation4], 4294966784 }
  0xa4   :  { %62 = vsyncpa [#allocation3], 1 }
  0xa5   :  { %63 = vsyncpa [#allocation4], 1 }

</bundles_post_ra>
